<compile_context>
chip_gen: v5e
topology: v5e:2x2
jax: 0.10.0
libtpu: 0.0.40
codegen_flags: <defaults>
</compile_context>

<pallas_src>
import functools

import jax
import jax.numpy as jnp
from jax.experimental import pallas as pl
from jax.experimental.pallas import tpu as pltpu


def _round_up(x, m):
    return (x + m - 1) // m * m


# --------------------------------------------------------------------------- #
# Kernel
# --------------------------------------------------------------------------- #
def dueling_kernel(state_ref, w1_ref, b1_ref, wh_ref, bh_ref, wo_ref, bo_ref,
                   out_ref):
    """One batch tile: feature layer + fully-fused dueling heads.

    Output slab layout (lane-dense, width 128) is entirely encoded in wo/bo:
      cols [0, A)   : adv + val
      col  A        : per-row sum of adv (global mean finished in wrapper)
      cols [A+1,..) : zeros
    """
    # feature = ReLU(state @ W1 + b1)                        (TB, H)
    x = jnp.dot(state_ref[...], w1_ref[...], preferred_element_type=jnp.float32)
    x = jnp.maximum(x + b1_ref[...], 0.0)

    # fused head hidden layer: ReLU(x @ [Wa1 | Wv1] + [ba1 | bv1])   (TB, 2H)
    h = jnp.dot(x, wh_ref[...], preferred_element_type=jnp.float32)
    h = jnp.maximum(h + bh_ref[...], 0.0)

    # fused head output layer (adv+val, adv row sum, zeros all baked into wo/bo)
    out_ref[...] = (jnp.dot(h, wo_ref[...], preferred_element_type=jnp.float32)
                    + bo_ref[...])


# --------------------------------------------------------------------------- #
# Wrapper
# --------------------------------------------------------------------------- #
def dueling_forward(state, packed, *, action_size):
    """state: (B, state_size) f32.  packed: dict of fused, pre-transposed params."""
    B, S = state.shape
    A = action_size
    PAD = packed["wo"].shape[1]                 # lane-dense output width (>= 128)

    # Batch tiling with minimal padding: n_tiles tiles of TB rows (TB multiple of 8).
    n_tiles = pl.cdiv(B, 256)
    TB = _round_up(-(-B // n_tiles), 8)
    B_pad = n_tiles * TB

    state_p = state if B_pad == B else jnp.pad(state, ((0, B_pad - B), (0, 0)))

    def const_spec(arr):
        # whole-array, resident in VMEM across all grid steps
        return pl.BlockSpec(arr.shape, lambda i: (0, 0))

    slab = pl.pallas_call(
        dueling_kernel,
        out_shape=jax.ShapeDtypeStruct((B_pad, PAD), jnp.float32),
        grid=(n_tiles,),
        in_specs=[
            pl.BlockSpec((TB, S), lambda i: (i, 0)),        # state: tiled over batch
            const_spec(packed["w1"]), const_spec(packed["b1"]),
            const_spec(packed["wh"]), const_spec(packed["bh"]),
            const_spec(packed["wo"]), const_spec(packed["bo"]),
        ],
        out_specs=pl.BlockSpec((TB, PAD), lambda i: (i, 0)),
        compiler_params=pltpu.CompilerParams(
            dimension_semantics=("parallel",)),
    )(state_p, packed["w1"], packed["b1"], packed["wh"], packed["bh"],
      packed["wo"], packed["bo"])

    adv_plus_val = slab[:B, :A]                       # (B, A)
    adv_mean = jnp.sum(slab[:B, A]) / (B * A)         # scalar mean over ALL adv elems
    return adv_plus_val - adv_mean


# --------------------------------------------------------------------------- #
# Parameter construction (PyTorch-style init, noise folded into effective W/b)
# --------------------------------------------------------------------------- #
def _f_noise(key, size):
    x = jax.random.normal(key, (size,), jnp.float32)
    return jnp.sign(x) * jnp.sqrt(jnp.abs(x))


def _plain_linear(key, fan_in, fan_out):
    kw, kb = jax.random.split(key)
    bound = 1.0 / (fan_in ** 0.5)
    w = jax.random.uniform(kw, (fan_in, fan_out), jnp.float32, -bound, bound)
    b = jax.random.uniform(kb, (1, fan_out), jnp.float32, -bound, bound)
    return w, b


def _noisy_linear(kparam, knoise, fan_in, fan_out, std_init=0.1, training=True):
    """Effective (W, b) of a NoisyLinear, pre-transposed to (in, out)."""
    kw, kb = jax.random.split(kparam)
    bound = 1.0 / (fan_in ** 0.5)
    w_mu = jax.random.uniform(kw, (fan_in, fan_out), jnp.float32, -bound, bound)
    b_mu = jax.random.uniform(kb, (1, fan_out), jnp.float32, -bound, bound)
    if not training:
        return w_mu, b_mu
    sigma = std_init / (fan_in ** 0.5)
    k_in, k_out = jax.random.split(knoise)
    eps_in = _f_noise(k_in, fan_in)
    eps_out = _f_noise(k_out, fan_out)
    w_eps = jnp.outer(eps_in, eps_out)        # transposed layout of eps_out ⊗ eps_in
    b_eps = eps_out[None, :]
    return w_mu + sigma * w_eps, b_mu + sigma * b_eps


def init_params(key, state_size, action_size, nb_hidden, training=True):
    kf, ka1, ka2, kv1, kv2, na1, na2, nv1, nv2 = jax.random.split(key, 9)
    w1, b1 = _plain_linear(kf, state_size, nb_hidden)
    wa1, ba1 = _noisy_linear(ka1, na1, nb_hidden, nb_hidden, training=training)
    wa2, ba2 = _noisy_linear(ka2, na2, nb_hidden, action_size, training=training)
    wv1, bv1 = _noisy_linear(kv1, nv1, nb_hidden, nb_hidden, training=training)
    wv2, bv2 = _noisy_linear(kv2, nv2, nb_hidden, 1, training=training)
    return dict(w1=w1, b1=b1, wa1=wa1, ba1=ba1, wa2=wa2, ba2=ba2,
                wv1=wv1, bv1=bv1, wv2=wv2, bv2=bv2)


def pack_params(p):
    """Fuse the two heads.

    Hidden: one (H, 2H) weight = [Wa1 | Wv1].
    Output: one (2H, PAD) weight whose columns directly produce the lane-dense
    output slab:
      cols [0, A) : [Wa2[:, j]; Wv2]  with bias ba2_j + bv2   -> adv_j + val
      col  A      : [sum_j Wa2[:, j]; 0] with bias sum(ba2)   -> per-row adv sum
      rest        : zeros
    """
    H = p["w1"].shape[1]
    A = p["wa2"].shape[1]
    PAD = max(128, _round_up(A + 1, 128))

    wh = jnp.concatenate([p["wa1"], p["wv1"]], axis=1)           # (H, 2H)
    bh = jnp.concatenate([p["ba1"], p["bv1"]], axis=1)           # (1, 2H)

    wo = jnp.zeros((2 * H, PAD), jnp.float32)
    wo = wo.at[:H, :A].set(p["wa2"])
    wo = wo.at[H:, :A].set(jnp.broadcast_to(p["wv2"], (H, A)))   # value bcast per col
    wo = wo.at[:H, A].set(jnp.sum(p["wa2"], axis=1))             # adv row-sum column

    bo = jnp.zeros((1, PAD), jnp.float32)
    bo = bo.at[:, :A].set(p["ba2"] + p["bv2"])
    bo = bo.at[:, A].set(jnp.sum(p["ba2"]))

    return dict(w1=p["w1"], b1=p["b1"], wh=wh, bh=bh, wo=wo, bo=bo)


def reference_forward(state, p):
    x = jnp.maximum(state @ p["w1"] + p["b1"], 0.0)
    adv = jnp.maximum(x @ p["wa1"] + p["ba1"], 0.0) @ p["wa2"] + p["ba2"]
    val = jnp.maximum(x @ p["wv1"] + p["bv1"], 0.0) @ p["wv2"] + p["bv2"]
    return adv + val - jnp.mean(adv)


# --------------------------------------------------------------------------- #
if __name__ == "__main__":
    B, state_size, nb_hidden, action_size = 8, 16, 32, 4

    key = jax.random.PRNGKey(0)
    k_state, k_params, k_state2 = jax.random.split(key, 3)
    state = jax.random.normal(k_state, (B, state_size), dtype=jnp.float32)
    params = init_params(k_params, state_size, action_size, nb_hidden, training=True)
    packed = pack_params(params)

    fwd = jax.jit(functools.partial(dueling_forward, action_size=action_size))

    out = jax.block_until_ready(fwd(state, packed))
    ref = reference_forward(state, params)
    assert out.shape == (B, action_size)
    assert jnp.allclose(out, ref, atol=1e-5, rtol=1e-5), "mismatch vs JAX reference (B=8)"

    # Second check: a larger batch that is NOT a multiple of the batch tile,
    # exercising the batch grid, padding, and the global-mean accumulation.
    B2 = 300
    state2 = jax.random.normal(k_state2, (B2, state_size), dtype=jnp.float32)
    out2 = jax.block_until_ready(fwd(state2, packed))
    ref2 = reference_forward(state2, params)
    assert out2.shape == (B2, action_size)
    assert jnp.allclose(out2, ref2, atol=1e-4, rtol=1e-4), "mismatch vs JAX reference (B=300)"

    print("KERNEL_OK")
</pallas_src>

<mosaic_0001>
module attributes {stable_mosaic.version = 11 : i64} {
  func.func @dueling_kernel(%arg0: i32, %arg1: memref<8x16xf32, #tpu.memory_space<vmem>>, %arg2: memref<16x32xf32, #tpu.memory_space<vmem>>, %arg3: memref<1x32xf32, #tpu.memory_space<vmem>>, %arg4: memref<32x64xf32, #tpu.memory_space<vmem>>, %arg5: memref<1x64xf32, #tpu.memory_space<vmem>>, %arg6: memref<64x128xf32, #tpu.memory_space<vmem>>, %arg7: memref<1x128xf32, #tpu.memory_space<vmem>>, %arg8: memref<8x128xf32, #tpu.memory_space<vmem>>) attributes {dimension_semantics = [#tpu.dimension_semantics<parallel>], iteration_bounds = array<i64: 1>, scalar_prefetch = 0 : i64, scratch_operands = 0 : i64, tpu.core_type = #tpu.core_type<tc>, window_params = [{transform_indices = @transform_0, window_bounds = array<i64: 8, 16>}, {pipeline_mode = #tpu.pipeline_mode<synchronous>, transform_indices = @transform_1, window_bounds = array<i64: 16, 32>}, {pipeline_mode = #tpu.pipeline_mode<synchronous>, transform_indices = @transform_2, window_bounds = array<i64: 1, 32>}, {pipeline_mode = #tpu.pipeline_mode<synchronous>, transform_indices = @transform_3, window_bounds = array<i64: 32, 64>}, {pipeline_mode = #tpu.pipeline_mode<synchronous>, transform_indices = @transform_4, window_bounds = array<i64: 1, 64>}, {pipeline_mode = #tpu.pipeline_mode<synchronous>, transform_indices = @transform_5, window_bounds = array<i64: 64, 128>}, {pipeline_mode = #tpu.pipeline_mode<synchronous>, transform_indices = @transform_6, window_bounds = array<i64: 1, 128>}, {transform_indices = @transform_7, window_bounds = array<i64: 8, 128>}]} {
    %c0 = arith.constant 0 : index
    %c0_0 = arith.constant 0 : index
    %0 = vector.load %arg1[%c0, %c0_0] : memref<8x16xf32, #tpu.memory_space<vmem>>, vector<8x16xf32>
    %c0_1 = arith.constant 0 : index
    %c0_2 = arith.constant 0 : index
    %1 = vector.load %arg2[%c0_1, %c0_2] : memref<16x32xf32, #tpu.memory_space<vmem>>, vector<16x32xf32>
    %cst = arith.constant dense<0.000000e+00> : vector<8x32xf32>
    %2 = tpu.matmul %0, %1, %cst {dimension_numbers = #tpu.dot_dimension_numbers<[1], [0], [0], [1], [0, 0, 1, 1], [], []>} : vector<8x16xf32>, vector<16x32xf32>, vector<8x32xf32> -> vector<8x32xf32>
    %c0_3 = arith.constant 0 : index
    %c0_4 = arith.constant 0 : index
    %3 = vector.load %arg3[%c0_3, %c0_4] : memref<1x32xf32, #tpu.memory_space<vmem>>, vector<1x32xf32>
    %4 = vector.broadcast %3 : vector<1x32xf32> to vector<8x32xf32>
    %5 = arith.addf %2, %4 : vector<8x32xf32>
    %cst_5 = arith.constant 0.000000e+00 : f32
    %6 = vector.broadcast %cst_5 : f32 to vector<8x32xf32>
    %7 = arith.maximumf %5, %6 : vector<8x32xf32>
    %c0_6 = arith.constant 0 : index
    %c0_7 = arith.constant 0 : index
    %8 = vector.load %arg4[%c0_6, %c0_7] : memref<32x64xf32, #tpu.memory_space<vmem>>, vector<32x64xf32>
    %cst_8 = arith.constant dense<0.000000e+00> : vector<8x64xf32>
    %9 = tpu.matmul %7, %8, %cst_8 {dimension_numbers = #tpu.dot_dimension_numbers<[1], [0], [0], [1], [0, 0, 1, 1], [], []>} : vector<8x32xf32>, vector<32x64xf32>, vector<8x64xf32> -> vector<8x64xf32>
    %c0_9 = arith.constant 0 : index
    %c0_10 = arith.constant 0 : index
    %10 = vector.load %arg5[%c0_9, %c0_10] : memref<1x64xf32, #tpu.memory_space<vmem>>, vector<1x64xf32>
    %11 = vector.broadcast %10 : vector<1x64xf32> to vector<8x64xf32>
    %12 = arith.addf %9, %11 : vector<8x64xf32>
    %cst_11 = arith.constant 0.000000e+00 : f32
    %13 = vector.broadcast %cst_11 : f32 to vector<8x64xf32>
    %14 = arith.maximumf %12, %13 : vector<8x64xf32>
    %c0_12 = arith.constant 0 : index
    %c0_13 = arith.constant 0 : index
    %15 = vector.load %arg6[%c0_12, %c0_13] : memref<64x128xf32, #tpu.memory_space<vmem>>, vector<64x128xf32>
    %cst_14 = arith.constant dense<0.000000e+00> : vector<8x128xf32>
    %16 = tpu.matmul %14, %15, %cst_14 {dimension_numbers = #tpu.dot_dimension_numbers<[1], [0], [0], [1], [0, 0, 1, 1], [], []>} : vector<8x64xf32>, vector<64x128xf32>, vector<8x128xf32> -> vector<8x128xf32>
    %c0_15 = arith.constant 0 : index
    %c0_16 = arith.constant 0 : index
    %17 = vector.load %arg7[%c0_15, %c0_16] : memref<1x128xf32, #tpu.memory_space<vmem>>, vector<1x128xf32>
    %18 = vector.broadcast %17 : vector<1x128xf32> to vector<8x128xf32>
    %19 = arith.addf %16, %18 : vector<8x128xf32>
    %c0_17 = arith.constant 0 : index
    %c0_18 = arith.constant 0 : index
    %20 = vector.load %arg8[%c0_17, %c0_18] : memref<8x128xf32, #tpu.memory_space<vmem>>, vector<8x128xf32>
    tpu.vector_store %arg8[%c0_17, %c0_18], %19 {strides = array<i32>} : memref<8x128xf32, #tpu.memory_space<vmem>>, vector<8x128xf32>,
    return
  }
  func.func @transform_0(%arg0: i32) -> (i32, i32) {
    %c0_i32 = arith.constant 0 : i32
    %c0_i32_0 = arith.constant 0 : i32
    return %arg0, %c0_i32 : i32, i32
  }
  func.func @transform_1(%arg0: i32) -> (i32, i32) {
    %c0_i32 = arith.constant 0 : i32
    %c0_i32_0 = arith.constant 0 : i32
    %c0_i32_1 = arith.constant 0 : i32
    return %c0_i32, %c0_i32_0 : i32, i32
  }
  func.func @transform_2(%arg0: i32) -> (i32, i32) {
    %c0_i32 = arith.constant 0 : i32
    %c0_i32_0 = arith.constant 0 : i32
    %c0_i32_1 = arith.constant 0 : i32
    return %c0_i32, %c0_i32_0 : i32, i32
  }
  func.func @transform_3(%arg0: i32) -> (i32, i32) {
    %c0_i32 = arith.constant 0 : i32
    %c0_i32_0 = arith.constant 0 : i32
    %c0_i32_1 = arith.constant 0 : i32
    return %c0_i32, %c0_i32_0 : i32, i32
  }
  func.func @transform_4(%arg0: i32) -> (i32, i32) {
    %c0_i32 = arith.constant 0 : i32
    %c0_i32_0 = arith.constant 0 : i32
    %c0_i32_1 = arith.constant 0 : i32
    return %c0_i32, %c0_i32_0 : i32, i32
  }
  func.func @transform_5(%arg0: i32) -> (i32, i32) {
    %c0_i32 = arith.constant 0 : i32
    %c0_i32_0 = arith.constant 0 : i32
    %c0_i32_1 = arith.constant 0 : i32
    return %c0_i32, %c0_i32_0 : i32, i32
  }
  func.func @transform_6(%arg0: i32) -> (i32, i32) {
    %c0_i32 = arith.constant 0 : i32
    %c0_i32_0 = arith.constant 0 : i32
    %c0_i32_1 = arith.constant 0 : i32
    return %c0_i32, %c0_i32_0 : i32, i32
  }
  func.func @transform_7(%arg0: i32) -> (i32, i32) {
    %c0_i32 = arith.constant 0 : i32
    %c0_i32_0 = arith.constant 0 : i32
    return %arg0, %c0_i32 : i32, i32
  }
}

</mosaic_0001>

<bundles_post_ra>
// kernel: dueling_forward.1
= control target key start
LH: loop header
LB: loop body
LE: loop exit
PB: predicated region body
PF: predicated region fallthrough
CT: control target
= control target key end

     0   :  { %12 = vsyncpa [#allocation3], 0  ;;  %s419_s0 = inlined_call_operand.hbm [shape: f32[8,16], index: 0, kind: input, shape index: {}]   ;;  %s420_s1 = inlined_call_operand.hbm [shape: f32[16,32], index: 1, kind: input, shape index: {}]   ;;  %s421_s2 = inlined_call_operand.hbm [shape: f32[1,32], index: 2, kind: input, shape index: {}]   ;;  %s422_s3 = inlined_call_operand.hbm [shape: f32[32,64], index: 3, kind: input, shape index: {}]   ;;  %s423_s4 = inlined_call_operand.vmem [shape: f32[1,64], index: 4, kind: input, shape index: {}]   ;;  %s424_s5 = inlined_call_operand.hbm [shape: f32[64,128], index: 5, kind: input, shape index: {}]   ;;  %s425_s6 = inlined_call_operand.vmem [shape: f32[1,128], index: 6, kind: input, shape index: {}]   ;;  %s426_s7 = inlined_call_operand.vmem [shape: f32[8,128], index: 7, kind: output, shape index: {}]  }
   0x1   :  { %13 = vsyncpa [#allocation5], 0  ;;  %s30_s26 = sshll.u32 %s420_s1, 4  ;;  %s31_s26 = int_to_ptr.hbm [resolvable:$true] %s30_s26 }
   0x2   :  { %14 = vsyncpa [#allocation8], 0  ;;  %s348_s27 = smov [#allocation4]   ;;  %s54_s8 = sshll.u32 %s422_s3, 4  ;;  %s55_s8 = int_to_ptr.hbm [resolvable:$true] %s54_s8 }
   0x3   :  { %s32_s28 = sshll.u32 %s348_s27, 4  ;;  %s349_s9 = smov 128   ;;  %s33_s28 = int_to_ptr.vmem [resolvable:$true] %s32_s28 }
   0x4   :  { %s350_s10 = smov 8   ;;  %s351_s11 = smov [#allocation7]  }
   0x5   :  { %38 = dma.hbm_to_vmem [thread:$0]  %s31_s26, 256, %s33_s28, [#allocation5], %s349_s9, %s349_s9, %s350_s10  }
   0x6   :  { %s56_s12 = sshll.u32 %s351_s11, 4  ;;  %s20_s15 = sshll.u32 %s419_s0, 4  ;;  %s57_s12 = int_to_ptr.vmem [resolvable:$true] %s56_s12  ;;  %s21_s15 = int_to_ptr.hbm [resolvable:$true] %s20_s15 }
   0x7   :  { %62 = dma.hbm_to_vmem [thread:$0]  %s55_s8, 512, %s57_s12, [#allocation8], %s349_s9, %s349_s9, %s350_s10  }
   0x8   :  { %s44_s17 = sshll.u32 %s421_s2, 4  ;;  %s352_s18 = smov [#allocation2]   ;;  %s45_s17 = int_to_ptr.hbm [resolvable:$true] %s44_s17 }
   0x9   :  { %s22_s19 = sshll.u32 %s352_s18, 4  ;;  %s353_s3 = smov [#allocation6]   ;;  %s23_s19 = int_to_ptr.vmem [resolvable:$true] %s22_s19 }
   0xa   :  { %25 = dma.hbm_to_vmem [thread:$0]  %s21_s15, 128, %s23_s19, [#allocation3]  }
   0xb   :  { %s46_s20 = sshll.u32 %s353_s3, 4  ;;  %s69_s23 = sshll.u32 %s424_s5, 4  ;;  %s47_s20 = int_to_ptr.vmem [resolvable:$true] %s46_s20  ;;  %s70_s23 = int_to_ptr.hbm [resolvable:$true] %s69_s23 }
   0xc   :  { %49 = dma.hbm_to_vmem [thread:$0]  %s45_s17, 16, %s47_s20, [#allocation5]  }
   0xd   :  { %s354_s0 = smov [#allocation9]  }
   0xe   :  { %s71_s24 = sshll.u32 %s354_s0, 4  ;;  %s72_s24 = int_to_ptr.vmem [resolvable:$true] %s71_s24 }
   0xf   :  { %77 = dma.hbm_to_vmem [thread:$0]  %s70_s23, 1024, %s72_s24, [#allocation8], %s349_s9, %s349_s9, %s350_s10  }
  0x10   :  { %342 = dma.done.wait [#allocation3], 128  }
  0x11   :  { %343 = vsyncadd [#allocation3], 4294967168 }
  0x12   :  { %344 = dma.done.wait [#allocation5], 272  }
  0x13   :  { %345 = vsyncadd [#allocation5], 4294967024 }
  0x14   :  { %346 = dma.done.wait [#allocation8], 1536  }
  0x15   :  { %347 = vsyncadd [#allocation8], 4294965760  ;;  %v102_v0 = vld [vmem:[#allocation4 + $0x8] sm:$0xff]  ;;  %v101_v1 = vld [vmem:[#allocation4] sm:$0xff]  ;;  %vm107_vm0 = vcmask 130048   ;;  %vm140_vm1 = vcmask 261120  }
  0x16   :  { %125 = vmatpush.msra.mxu0 %v102_v0  ;;  %v100_v2 = vld [vmem:[#allocation2] sm:$0xff]  ;;  %v135_v3 = vld [vmem:[#allocation7 + $0x18] sm:$0xff]  ;;  %v134_v4 = vld [vmem:[#allocation7 + $0x10] sm:$0xff]  ;;  %vm177_vm2 = vcmask 523264  }
  0x17   :  { %156 = vmatpush.msra.mxu1 %v135_v3  ;;  %v133_v5 = vld [vmem:[#allocation7 + $0x8] sm:$0xff]  ;;  %v132_v6 = vld [vmem:[#allocation7] sm:$0xff]  ;;  %v172_v7 = vld [vmem:[#allocation9 + $0x38] sm:$0xff] }
  0x18   :  { %126 = vmatpush.msra.mxu0 %v101_v1  ;;  %v171_v8 = vld [vmem:[#allocation9 + $0x30] sm:$0xff]  ;;  %189 = vmatpush.msra.mxu2 %v172_v7  ;;  %v170_v9 = vld [vmem:[#allocation9 + $0x28] sm:$0xff]  ;;  %v169_v10 = vld [vmem:[#allocation9 + $0x20] sm:$0xff] }
  0x19   :  { %209 = vmatmul.msk.f32.vlgmr.msra.gmra.mxu0 %vm107_vm0, %v100_v2  ;;  %157 = vmatpush.msra.mxu1 %v134_v4  ;;  %v168_v11 = vld [vmem:[#allocation9 + $0x18] sm:$0xff]  ;;  %v167_v16 = vld [vmem:[#allocation9 + $0x10] sm:$0xff]  ;;  %v166_v17 = vld [vmem:[#allocation9 + $0x8] sm:$0xff] }
  0x1a   :  { %190 = vmatpush.msra.mxu2 %v171_v8  ;;  %v219_v12 = vld [vmem:[#allocation6] ss:$0 sm:$0xff]  ;;  %v165_v18 = vld [vmem:[#allocation9] sm:$0xff] }
  0x1b   :  { %158 = vmatpush.msra.mxu1 %v133_v5  ;;  %v220_v19 = vld [vmem:[%s423_s4] ss:$0 sm:$0xff] }
  0x1c   :  { %191 = vmatpush.msra.mxu2 %v170_v9  ;;  %v221_v23 = vld [vmem:[%s425_s6] ss:$0 sm:$0xff] }
  0x1d   :  { %159 = vmatpush.msra.mxu1 %v132_v6 }
  0x1e   :  { %192 = vmatpush.msra.mxu2 %v169_v10 }
  0x20   :  { %193 = vmatpush.msra.mxu2 %v168_v11 }
  0x22   :  { %194 = vmatpush.msra.mxu2 %v167_v16 }
  0x24   :  { %195 = vmatpush.msra.mxu2 %v166_v17 }
  0x26   :  { %196 = vmatpush.msra.mxu2 %v165_v18 }
  0x96   :  { %v128_v13 = vpop.f32.mrf.mxu0 }
  0x97   :  { %v129_v14 = vadd.f32 %v219_v12, %v128_v13 }
  0x99   :  { %v131_v15 = vmax.f32 %v129_v14, 0.0 }
  0x9b   :  { %210 = vmatmul.msk.f32.vlgmr.msra.gmra.mxu1 %vm140_vm1, %v131_v15 }
 0x118   :  { %v161_v20 = vpop.f32.mrf.mxu1 }
 0x119   :  { %v162_v21 = vadd.f32 %v220_v19, %v161_v20 }
 0x11b   :  { %v164_v22 = vmax.f32 %v162_v21, 0.0 }
 0x11d   :  { %211 = vmatmul.msk.f32.vlgmr.msra.gmra.mxu2 %vm177_vm2, %v164_v22 }
 0x1a0   :  { %v198_v24 = vpop.f32.mrf.mxu2 }
 0x1a1   :  { %v199_v25 = vadd.f32 %v221_v23, %v198_v24 }
 0x1a3   :  { %201 = vst [vmem:[%s426_s7] sm:$0xff] %v199_v25 }
 0x1a4   :  { %206 = vsyncpa [#allocation3], 1 }
 0x1a5   :  { %207 = vsyncpa [#allocation5], 1 }
 0x1a6   :  { %208 = vsyncpa [#allocation8], 1 }

</bundles_post_ra>
